<compile_context>
chip_gen: v7x
topology: tpu7x:2x2x1
jax: 0.10.0
libtpu: 0.0.40
codegen_flags: <defaults>
</compile_context>

<pallas_src>
import functools

import jax
import jax.numpy as jnp
from jax.experimental import pallas as pl
from jax.experimental.pallas import tpu as pltpu

_LANES = 128
# ~2 MiB per tile buffer; 6 buffers (1 in + 2 out, double-buffered) = ~12 MiB,
# inside v5e's 16 MiB scoped-VMEM default and v7x's 64 MiB physical VMEM.
_TARGET_TILE_BYTES = 2 * 1024 * 1024


def _round_up(a: int, b: int) -> int:
    return ((a + b - 1) // b) * b


def _sublane_multiple(dtype) -> int:
    # f32 packs 8 rows per vreg sublane group, bf16 packs 16, int8/fp8 pack 32.
    itemsize = jnp.dtype(dtype).itemsize
    return max(8, 32 // max(itemsize, 1))


# ----------------------------------------------------------------------------
# Kernel: one tile of X in, the same tile of both outputs out.
# ----------------------------------------------------------------------------
def _crelu_kernel(x_ref, pos_ref, neg_ref):
    x = x_ref[...]
    zero = jnp.zeros((), dtype=x.dtype)
    pos_ref[...] = jnp.maximum(x, zero)        # ReLU(X)
    neg_ref[...] = -jnp.maximum(-x, zero)      # -ReLU(-X)  (signed-zero faithful)


# ----------------------------------------------------------------------------
# Wrapper: lane-dense (rows, 128) slab, ragged last block, pad only if needed.
# ----------------------------------------------------------------------------
def crelu(x, *, block_rows: int | None = None):
    """Returns (ReLU(x), -ReLU(-x)) with the same shape/dtype as x."""
    orig_shape = x.shape
    dtype = x.dtype

    flat = x.reshape(-1)
    n = flat.shape[0]
    if n == 0:
        z = jnp.zeros(orig_shape, dtype)
        return z, z

    itemsize = jnp.dtype(dtype).itemsize
    sub = _sublane_multiple(dtype)

    # Dtype-aware tile rows: keep bytes/tile ~constant (~2 MiB) across dtypes.
    if block_rows is None:
        block_rows = _TARGET_TILE_BYTES // (_LANES * itemsize)
    block_rows = max(sub, _round_up(block_rows, sub))

    if n % _LANES == 0:
        # Fast path: no pad, no output slice — kernel moves exactly 3N bytes.
        rows = n // _LANES
        padded = False
    else:
        # Slow path only when n is not lane-aligned: pad to a sublane-aligned
        # number of rows (one small pad + one small slice on each output).
        rows = _round_up(pl.cdiv(n, _LANES), sub)
        flat = jnp.pad(flat, (0, rows * _LANES - n))
        padded = True

    x2d = flat.reshape(rows, _LANES)

    tb = min(block_rows, _round_up(rows, sub))      # tile rows, sublane-aligned
    grid = (pl.cdiv(rows, tb),)                     # ragged last block is masked

    tile_spec = pl.BlockSpec((tb, _LANES), lambda i: (i, 0))

    pos2d, neg2d = pl.pallas_call(
        _crelu_kernel,
        out_shape=(
            jax.ShapeDtypeStruct((rows, _LANES), dtype),
            jax.ShapeDtypeStruct((rows, _LANES), dtype),
        ),
        grid=grid,
        in_specs=[tile_spec],
        out_specs=(tile_spec, tile_spec),
        compiler_params=pltpu.CompilerParams(
            # Tiles are independent; lets multi-TC parts shard the row axis.
            dimension_semantics=("parallel",),
        ),
    )(x2d)

    if padded:
        pos = pos2d.reshape(-1)[:n].reshape(orig_shape)
        neg = neg2d.reshape(-1)[:n].reshape(orig_shape)
    else:
        pos = pos2d.reshape(orig_shape)
        neg = neg2d.reshape(orig_shape)
    return pos, neg


# Pure-JAX reference (mirrors the PyTorch module exactly).
def _crelu_ref(x):
    return jnp.maximum(x, 0.0), -jnp.maximum(-x, 0.0)


if __name__ == "__main__":
    key = jax.random.PRNGKey(0)

    # Primary test: shape consistent with a conv activation, lane-aligned fast path.
    x = jax.random.normal(key, (2, 4, 16, 16), dtype=jnp.float32)
    crelu_jit = jax.jit(crelu)
    pos, neg = jax.block_until_ready(crelu_jit(x))

    ref_pos, ref_neg = _crelu_ref(x)
    assert pos.shape == x.shape and neg.shape == x.shape
    assert pos.dtype == x.dtype and neg.dtype == x.dtype
    assert jnp.allclose(pos, ref_pos, atol=1e-6, rtol=1e-6)
    assert jnp.allclose(neg, ref_neg, atol=1e-6, rtol=1e-6)

    # Secondary test: non-lane-aligned size exercises the (rare) pad/slice path.
    key2 = jax.random.PRNGKey(0)
    y = jax.random.normal(key2, (3, 5, 7), dtype=jnp.float32)
    pos_y, neg_y = jax.block_until_ready(jax.jit(crelu)(y))
    ref_py, ref_ny = _crelu_ref(y)
    assert pos_y.shape == y.shape and neg_y.shape == y.shape
    assert jnp.allclose(pos_y, ref_py, atol=1e-6, rtol=1e-6)
    assert jnp.allclose(neg_y, ref_ny, atol=1e-6, rtol=1e-6)

    print("KERNEL_OK")
</pallas_src>

<mosaic_0001>
module attributes {stable_mosaic.version = 11 : i64} {
  func.func @_crelu_kernel(%arg0: i32, %arg1: memref<16x128xf32, #tpu.memory_space<vmem>>, %arg2: memref<16x128xf32, #tpu.memory_space<vmem>>, %arg3: memref<16x128xf32, #tpu.memory_space<vmem>>) attributes {dimension_semantics = [#tpu.dimension_semantics<parallel>], iteration_bounds = array<i64: 1>, scalar_prefetch = 0 : i64, scratch_operands = 0 : i64, tpu.core_type = #tpu.core_type<tc>, window_params = [{transform_indices = @transform_0, window_bounds = array<i64: 16, 128>}, {transform_indices = @transform_1, window_bounds = array<i64: 16, 128>}, {transform_indices = @transform_2, window_bounds = array<i64: 16, 128>}]} {
    %c0 = arith.constant 0 : index
    %c0_0 = arith.constant 0 : index
    %0 = vector.load %arg1[%c0, %c0_0] : memref<16x128xf32, #tpu.memory_space<vmem>>, vector<16x128xf32>
    %cst = arith.constant 0.000000e+00 : f32
    %1 = vector.broadcast %cst : f32 to vector<16x128xf32>
    %2 = arith.maximumf %0, %1 : vector<16x128xf32>
    %c0_1 = arith.constant 0 : index
    %c0_2 = arith.constant 0 : index
    %3 = vector.load %arg2[%c0_1, %c0_2] : memref<16x128xf32, #tpu.memory_space<vmem>>, vector<16x128xf32>
    tpu.vector_store %arg2[%c0_1, %c0_2], %2 {strides = array<i32>} : memref<16x128xf32, #tpu.memory_space<vmem>>, vector<16x128xf32>,
    %cst_3 = arith.constant 0.000000e+00 : f32
    %4 = vector.broadcast %cst_3 : f32 to vector<16x128xf32>
    %5 = arith.subf %4, %0 : vector<16x128xf32>
    %cst_4 = arith.constant 0.000000e+00 : f32
    %6 = vector.broadcast %cst_4 : f32 to vector<16x128xf32>
    %7 = arith.maximumf %5, %6 : vector<16x128xf32>
    %cst_5 = arith.constant 0.000000e+00 : f32
    %8 = vector.broadcast %cst_5 : f32 to vector<16x128xf32>
    %9 = arith.subf %8, %7 : vector<16x128xf32>
    %c0_6 = arith.constant 0 : index
    %c0_7 = arith.constant 0 : index
    %10 = vector.load %arg3[%c0_6, %c0_7] : memref<16x128xf32, #tpu.memory_space<vmem>>, vector<16x128xf32>
    tpu.vector_store %arg3[%c0_6, %c0_7], %9 {strides = array<i32>} : memref<16x128xf32, #tpu.memory_space<vmem>>, vector<16x128xf32>,
    return
  }
  func.func @transform_0(%arg0: i32) -> (i32, i32) {
    %c0_i32 = arith.constant 0 : i32
    %c0_i32_0 = arith.constant 0 : i32
    return %arg0, %c0_i32 : i32, i32
  }
  func.func @transform_1(%arg0: i32) -> (i32, i32) {
    %c0_i32 = arith.constant 0 : i32
    %c0_i32_0 = arith.constant 0 : i32
    return %arg0, %c0_i32 : i32, i32
  }
  func.func @transform_2(%arg0: i32) -> (i32, i32) {
    %c0_i32 = arith.constant 0 : i32
    %c0_i32_0 = arith.constant 0 : i32
    return %arg0, %c0_i32 : i32, i32
  }
}

</mosaic_0001>

<bundles_post_ra>
// kernel: crelu.1
= control target key start
LH: loop header
LB: loop body
LE: loop exit
PB: predicated region body
PF: predicated region fallthrough
CT: control target
= control target key end

     0   :  { %s65_s0 = inlined_call_operand.vmem [shape: f32[16,128], index: 0, kind: input, shape index: {}]   ;;  %s66_s1 = inlined_call_operand.vmem [shape: f32[16,128], index: 1, kind: output, shape index: {0}]   ;;  %s67_s2 = inlined_call_operand.vmem [shape: f32[16,128], index: 2, kind: output, shape index: {1}]  }
   0x1   :  { %v10_v0 = vld [vmem:[%s65_s0] sm:$0xff]  ;;  %v11_v1 = vld [vmem:[%s65_s0 + $0x8] sm:$0xff] }
   0x2   :  { %v12_v2 = vmax.f32 %v10_v0, 0.0  ;;  %v13_v3 = vmax.f32 %v11_v1, 0.0  ;;  %v16_v4 = vsub.f32 0.0, %v10_v0  ;;  %v17_v5 = vsub.f32 0.0, %v11_v1 }
   0x4   :  { %14 = vst [vmem:[%s66_s1] sm:$0xff] %v12_v2  ;;  %15 = vst [vmem:[%s66_s1 + $0x8] sm:$0xff] %v13_v3  ;;  %v18_v6 = vmax.f32 %v16_v4, 0.0  ;;  %v19_v7 = vmax.f32 %v17_v5, 0.0 }
   0x6   :  { %v20_v8 = vsub.f32 0.0, %v18_v6  ;;  %v21_v9 = vsub.f32 0.0, %v19_v7 }
   0x8   :  { %22 = vst [vmem:[%s67_s2] sm:$0xff] %v20_v8  ;;  %23 = vst [vmem:[%s67_s2 + $0x8] sm:$0xff] %v21_v9 }

</bundles_post_ra>
